<compile_context>
chip_gen: v7x
topology: tpu7x:2x2x1
jax: 0.10.0
libtpu: 0.0.40
codegen_flags: <defaults>
</compile_context>

<pallas_src>
import jax
import jax.numpy as jnp
from jax.experimental import pallas as pl
from jax.experimental.pallas import tpu as pltpu


_VMEM_BUDGET = 12 * 1024 * 1024   # target for the double-buffered working set
_VMEM_LIMIT = 32 * 1024 * 1024    # scoped-VMEM ceiling handed to Mosaic


def _add_pe_kernel(x_ref, p_ref, o_ref):
    # Elementwise add; p broadcasts over the leading (batch) dim when its
    # block is (1, tF).  dropout(p=0) is the identity.
    o_ref[...] = x_ref[...] + p_ref[...]


def _build_pe(T, H, dtype):
    """Sinusoidal PE table identical to the PyTorch module's self.P[0, :T, :]."""
    pos = jnp.arange(T, dtype=jnp.float32)[:, None]                       # (T, 1)
    div = jnp.power(10000.0, jnp.arange(0, H, 2, dtype=jnp.float32) / H)  # (ceil(H/2),)
    ang = pos / div                                                       # (T, ceil(H/2))
    pe = jnp.zeros((T, H), dtype=jnp.float32)
    pe = pe.at[:, 0::2].set(jnp.sin(ang))
    pe = pe.at[:, 1::2].set(jnp.cos(ang)[:, : H // 2])
    return pe.astype(dtype)


def _sublanes(itemsize):
    """Native sublane multiple for the dtype (f32: 8, bf16: 16, int8/fp8: 32)."""
    return {4: 8, 2: 16, 1: 32}.get(itemsize, 8)


def _pick_seq_tile(T, H, itemsize):
    """Largest seq tile (dtype-native sublane multiple) keeping x+out+P,
    double-buffered, under the VMEM budget."""
    sub = _sublanes(itemsize)
    bytes_per_row = 3 * 2 * H * itemsize              # (x + out + P) x 2 buffers
    tS = (_VMEM_BUDGET // bytes_per_row) // sub * sub
    tS = max(sub, tS)
    return T if tS >= T else tS


def _pick_flat_tile(B, F, itemsize):
    """Flat-axis tile (multiple of 128 lanes) for the lane-dense fallback path,
    accounting for sublane padding of the (B, tF) blocks in VMEM."""
    sub = _sublanes(itemsize)
    rows_x = pl.cdiv(B, sub) * sub                    # padded rows of an x/out block
    rows_p = sub                                      # padded rows of the (1, tF) P block
    bytes_per_col = 2 * (2 * rows_x + rows_p) * itemsize
    tF = (_VMEM_BUDGET // bytes_per_col) // 128 * 128
    tF = max(128, tF)
    # Big problems: prefer >= 4 grid steps so v7x megacore gets both cores busy
    # and the software pipeline has steps to overlap (each step ~0.35 us).
    if B * F * itemsize >= (2 << 20):
        tF = min(tF, max(128, (F // 4) // 128 * 128))
    return F if tF >= F else tF


def positional_encoding(x, max_len=1000):
    """x: (B, T, H). Returns x + P[:, :T, :] (dropout p=0 -> identity)."""
    B, T, H = x.shape
    assert T <= max_len
    itemsize = jnp.dtype(x.dtype).itemsize

    pe = _build_pe(T, H, x.dtype)                     # (T, H), built once by XLA

    cost = pl.CostEstimate(
        flops=B * T * H,
        transcendentals=0,
        bytes_accessed=(2 * B * T * H + T * H) * itemsize,
    )

    if H % 128 == 0:
        # -------- lane-dense as-is: (seq, H) blocks, batch-innermost grid ----
        tS = _pick_seq_tile(T, H, itemsize)
        num_s = pl.cdiv(T, tS)
        if num_s == 1:
            # Whole (T, H) fits one block: iterate batch only (leading parallel
            # axis -> v7x megacore still splits); P block index is constant, so
            # it is fetched once and stays VMEM-resident.
            grid = (B,)
            in_specs = [
                pl.BlockSpec((pl.Squeezed(), T, H), lambda b: (b, 0, 0)),
                pl.BlockSpec((T, H), lambda b: (0, 0)),
            ]
            out_specs = pl.BlockSpec((pl.Squeezed(), T, H), lambda b: (b, 0, 0))
            dims = ("parallel",)
        else:
            # Batch is the fastest axis -> the P block index is unchanged
            # across it and the tile stays resident (P read once total).
            grid = (num_s, B)
            in_specs = [
                pl.BlockSpec((pl.Squeezed(), tS, H), lambda s, b: (b, s, 0)),
                pl.BlockSpec((tS, H), lambda s, b: (s, 0)),
            ]
            out_specs = pl.BlockSpec((pl.Squeezed(), tS, H), lambda s, b: (b, s, 0))
            dims = ("parallel", "parallel")

        return pl.pallas_call(
            _add_pe_kernel,
            out_shape=jax.ShapeDtypeStruct((B, T, H), x.dtype),
            grid_spec=pltpu.PrefetchScalarGridSpec(
                num_scalar_prefetch=0,
                grid=grid,
                in_specs=in_specs,
                out_specs=out_specs,
            ),
            compiler_params=pltpu.CompilerParams(
                dimension_semantics=dims,
                vmem_limit_bytes=_VMEM_LIMIT,
            ),
            cost_estimate=cost,
        )(x, pe)

    # -------- H not lane-aligned: flatten rows so stores are lane-dense ------
    F = T * H
    xf = x.reshape(B, F)                              # row-major reshape: free
    pf = pe.reshape(1, F)
    tF = _pick_flat_tile(B, F, itemsize)
    num_f = pl.cdiv(F, tF)

    out = pl.pallas_call(
        _add_pe_kernel,
        out_shape=jax.ShapeDtypeStruct((B, F), x.dtype),
        grid_spec=pltpu.PrefetchScalarGridSpec(
            num_scalar_prefetch=0,
            grid=(num_f,),
            in_specs=[
                pl.BlockSpec((B, tF), lambda i: (0, i)),
                pl.BlockSpec((1, tF), lambda i: (0, i)),
            ],
            out_specs=pl.BlockSpec((B, tF), lambda i: (0, i)),
        ),
        compiler_params=pltpu.CompilerParams(
            dimension_semantics=("parallel",),
            vmem_limit_bytes=_VMEM_LIMIT,
        ),
        cost_estimate=cost,
    )(xf, pf)
    return out.reshape(B, T, H)


def positional_encoding_ref(x, max_len=1000):
    """Pure-JAX reference mirroring the PyTorch module exactly."""
    B, T, H = x.shape
    pos = jnp.arange(max_len, dtype=jnp.float32).reshape(-1, 1)
    div = jnp.power(10000.0, jnp.arange(0, H, 2, dtype=jnp.float32) / H)
    angles = pos / div
    P = jnp.zeros((1, max_len, H), dtype=jnp.float32)
    P = P.at[:, :, 0::2].set(jnp.sin(angles))
    P = P.at[:, :, 1::2].set(jnp.cos(angles)[:, : H // 2])
    return x + P[:, :T, :]


if __name__ == "__main__":
    key = jax.random.PRNGKey(0)
    batch, num_steps, encoding_dim = 2, 8, 32

    # Module usage in the source: pos_encoding(torch.zeros((1, T, H))).
    # Small random inputs exercise the add (zeros would also work).
    x = jax.random.normal(key, (batch, num_steps, encoding_dim), dtype=jnp.float32)

    out = positional_encoding(x)
    out = jax.block_until_ready(out)

    ref = positional_encoding_ref(x)
    assert out.shape == (batch, num_steps, encoding_dim)
    assert jnp.allclose(out, ref, atol=1e-5, rtol=1e-5)

    print("KERNEL_OK")
</pallas_src>

<mosaic_0001>
module attributes {stable_mosaic.version = 11 : i64} {
  func.func @_add_pe_kernel(%arg0: i32, %arg1: memref<2x256xf32, #tpu.memory_space<vmem>>, %arg2: memref<1x256xf32, #tpu.memory_space<vmem>>, %arg3: memref<2x256xf32, #tpu.memory_space<vmem>>) attributes {dimension_semantics = [#tpu.dimension_semantics<parallel>], iteration_bounds = array<i64: 1>, scalar_prefetch = 0 : i64, scratch_operands = 0 : i64, tpu.core_type = #tpu.core_type<tc>, window_params = [{transform_indices = @transform_0, window_bounds = array<i64: 2, 256>}, {transform_indices = @transform_1, window_bounds = array<i64: 1, 256>}, {transform_indices = @transform_2, window_bounds = array<i64: 2, 256>}]} {
    %c0 = arith.constant 0 : index
    %c0_0 = arith.constant 0 : index
    %0 = vector.load %arg1[%c0, %c0_0] : memref<2x256xf32, #tpu.memory_space<vmem>>, vector<2x256xf32>
    %c0_1 = arith.constant 0 : index
    %c0_2 = arith.constant 0 : index
    %1 = vector.load %arg2[%c0_1, %c0_2] : memref<1x256xf32, #tpu.memory_space<vmem>>, vector<1x256xf32>
    %2 = vector.broadcast %1 : vector<1x256xf32> to vector<2x256xf32>
    %3 = arith.addf %0, %2 : vector<2x256xf32>
    %c0_3 = arith.constant 0 : index
    %c0_4 = arith.constant 0 : index
    %4 = vector.load %arg3[%c0_3, %c0_4] : memref<2x256xf32, #tpu.memory_space<vmem>>, vector<2x256xf32>
    tpu.vector_store %arg3[%c0_3, %c0_4], %3 {strides = array<i32>} : memref<2x256xf32, #tpu.memory_space<vmem>>, vector<2x256xf32>,
    return
  }
  func.func @transform_0(%arg0: i32) -> (i32, i32) {
    %c0_i32 = arith.constant 0 : i32
    %c0_i32_0 = arith.constant 0 : i32
    return %c0_i32, %arg0 : i32, i32
  }
  func.func @transform_1(%arg0: i32) -> (i32, i32) {
    %c0_i32 = arith.constant 0 : i32
    %c0_i32_0 = arith.constant 0 : i32
    return %c0_i32, %arg0 : i32, i32
  }
  func.func @transform_2(%arg0: i32) -> (i32, i32) {
    %c0_i32 = arith.constant 0 : i32
    %c0_i32_0 = arith.constant 0 : i32
    return %c0_i32, %arg0 : i32, i32
  }
}

</mosaic_0001>

<bundles_post_ra>
// kernel: tpu_custom_call.1
= control target key start
LH: loop header
LB: loop body
LE: loop exit
PB: predicated region body
PF: predicated region fallthrough
CT: control target
= control target key end

     0   :  { %7 = vsyncpa [#allocation3], 0  ;;  %s157_s0 = inlined_call_operand.hbm [shape: f32[2,256], index: 0, kind: input, shape index: {}]   ;;  %s158_s1 = inlined_call_operand.vmem [shape: f32[1,256], index: 1, kind: input, shape index: {}]   ;;  %s159_s2 = inlined_call_operand.hbm [shape: f32[2,256], index: 2, kind: output, shape index: {}]  }
   0x1   :  { %8 = vsyncpa [#allocation4], 0  ;;  %s112_s9 = smov [#allocation2]   ;;  %s64_s13 = scalar_lea.hbm %s157_s0, 64 }
   0x2   :  { %s15_s10 = sshll.u32 %s112_s9, 4  ;;  %p65_p0 = scmp.ne.s32.totalorder %s157_s0, %s64_s13  ;;  %s16_s10 = int_to_ptr.vmem [resolvable:$true] %s15_s10 }
   0x3   :  { %p68_p1 = scmp.lt.u32.totalorder %s64_s13, %s157_s0 }
   0x5   :  { %p70_p2 = pnand %p68_p1, %p65_p0 }
   0x7   :  { %73 = shalt.err (!%p70_p2)
}
   0x8   :  { %s74_s18 = scalar_lea.vmem %s16_s10, 64  ;;  %p79_p4 = scmp.lt.s32.totalorder %s16_s10, %s16_s10 }
   0x9   :  { %p75_p3 = scmp.ne.s32.totalorder %s16_s10, %s74_s18  ;;  %p80_p5 = scmp.lt.s32.totalorder %s74_s18, %s74_s18 }
   0xb   :  { %p81_p6 = por %p80_p5, %p79_p4 }
   0xd   :  { %p82_p7 = pnand %p81_p6, %p75_p3 }
   0xf   :  { %85 = shalt.err (!%p82_p7)
}
  0x10   :  { %18 = dma.hbm_to_vmem [thread:$0]  %s157_s0, 64, %s16_s10, [#allocation3]  }
  0x11   :  { %108 = dma.done.wait [#allocation3], 64  }
  0x12   :  { %109 = vsyncadd [#allocation3], 4294967232  ;;  %v27_v0 = vlaneseq  ;;  %v113_v1 = vmov 1983009808   ;;  %v25_v7 = vld [vmem:[%s158_s1] sm:$0x3] }
  0x13   :  { %v37_v2 = vunpack.c.l.s4 %v113_v1  ;;  %v24_v12 = vld [vmem:[#allocation2] sm:$0xf]  ;;  %s114_s23 = smov [#allocation5]  }
  0x14   :  { %v28_v3 = vshrl.u32 %v27_v0, 7  ;;  %s52_s0 = sshll.u32 %s114_s23, 4  ;;  %s53_s0 = int_to_ptr.vmem [resolvable:$true] %s52_s0 }
  0x15   :  { %v38_v6 = vunpack.c.0.s8 %v37_v2  ;;  %s86_s24 = scalar_lea.vmem %s53_s0, 64  ;;  %p91_p9 = scmp.lt.s32.totalorder %s53_s0, %s53_s0 }
  0x16   :  { %v29_v4 = vsub.s32 0, %v28_v3  ;;  %v33_v5 = vsub.s32 1, %v28_v3  ;;  %p87_p8 = scmp.ne.s32.totalorder %s53_s0, %s86_s24  ;;  %p92_p10 = scmp.lt.s32.totalorder %s86_s24, %s86_s24 }
  0x17   :  { %v41_v10 = vsub.s32 %v38_v6, %v28_v3 }
  0x18   :  { %v30_v8 = vrot.slane %v25_v7, %v29_v4  ;;  %v34_v9 = vrot.slane %v25_v7, %v33_v5  ;;  %p93_p11 = por %p92_p10, %p91_p9 }
  0x1a   :  { %v35_v11 = vcombine.low %v30_v8, %v34_v9  ;;  %p94_p12 = pnand %p93_p11, %p87_p8 }
  0x1c   :  { %v42_v13 = vrot.slane %v35_v11, %v41_v10 }
  0x1e   :  { %v44_v14 = vadd.f32 %v42_v13, %v24_v12 }
  0x20   :  { %45 = vst [vmem:[#allocation5] sm:$0xf] %v44_v14 }
  0x21   :  { %97 = shalt.err (!%p94_p12)
}
  0x22   :  { %s98_s26 = scalar_lea.hbm %s159_s2, 64 }
  0x23   :  { %p99_p13 = scmp.ne.s32.totalorder %s159_s2, %s98_s26  ;;  %p102_p0 = scmp.lt.u32.totalorder %s98_s26, %s159_s2 }
  0x25   :  { %p104_p1 = pnand %p102_p0, %p99_p13 }
  0x27   :  { %107 = shalt.err (!%p104_p1)
}
  0x28   :  { %55 = dma.vmem_to_hbm [thread:$0]  %s53_s0, 64, %s159_s2, [#allocation4]  }
  0x29   :  { %110 = dma.done.wait [#allocation4], 64  }
  0x2a   :  { %111 = vsyncadd [#allocation4], 4294967232 }
  0x2b   :  { %59 = vsyncpa [#allocation3], 1 }
  0x2c   :  { %60 = vsyncpa [#allocation4], 1 }

</bundles_post_ra>
